<compile_context>
chip_gen: v5e
topology: v5e:2x2
jax: 0.10.0
libtpu: 0.0.40
codegen_flags: <defaults>
</compile_context>

<pallas_src>
import functools

import jax
import jax.numpy as jnp
from jax.experimental import pallas as pl
from jax.experimental.pallas import tpu as pltpu


def _layernorm(z, gamma, beta, eps=1e-5):
    mu = jnp.mean(z, axis=-1, keepdims=True)
    var = jnp.mean((z - mu) ** 2, axis=-1, keepdims=True)
    return (z - mu) * jax.lax.rsqrt(var + eps) * gamma + beta


def _silu(z):
    return z * jax.nn.sigmoid(z)


def edge_gated_conv_kernel(
    node_ref,     # [N, D]      f32, resident across the whole grid
    edge_ref,     # [TE, D]     f32, edge-feature tile
    src_oh_ref,   # [TE, N]     bf16 one-hot tile (edge -> source node)
    dst_oh_ref,   # [TE, N]     bf16 one-hot tile (edge -> destination node)
    wn_ref,       # [D, 4D]     f32 fused, pre-transposed node weights
    bn_ref,       # [1, 4D]     f32 fused node biases
    we_ref,       # [D, D]      f32 pre-transposed edge_gate weight
    be_ref,       # [1, D]      f32 edge_gate bias
    ln_ref,       # [4, 1, D]   f32 (gamma_nodes, beta_nodes, gamma_edges, beta_edges)
    x_out_ref,    # [N, D]      resident output (written at the last edge tile)
    y_out_ref,    # [TE, D]     per-tile edge output
    nlin_sc,      # VMEM [N, 4D] f32  fused node-linear activations
    nlin_bf_sc,   # VMEM [N, 4D] bf16 copy (MXU gather operand)
    acc_sc,       # VMEM [N, 2D] f32  [sum_sigma_h | sum_sigma]
):
    D = node_ref.shape[1]
    k = pl.program_id(0)

    # --- one-time node-side linears + accumulator init --------------------
    @pl.when(k == 0)
    def _init():
        h = node_ref[...].astype(jnp.float32)
        # columns: [src_gate | dst_gate | src_update | dst_update]
        nlin = jnp.dot(h, wn_ref[...], preferred_element_type=jnp.float32) + bn_ref[...]
        nlin_sc[...] = nlin
        nlin_bf_sc[...] = nlin.astype(jnp.bfloat16)
        acc_sc[...] = jnp.zeros_like(acc_sc)

    # --- per-edge-tile work ------------------------------------------------
    e_tile = edge_ref[...].astype(jnp.float32)
    e_edge = jnp.dot(e_tile, we_ref[...], preferred_element_type=jnp.float32) + be_ref[...]

    nlin_bf = nlin_bf_sc[...]
    src_oh = src_oh_ref[...]          # bf16
    dst_oh = dst_oh_ref[...]          # bf16

    # Gather node activations per edge: shared one-hot LHS, lane-dense 4D output.
    src_g = jnp.dot(src_oh, nlin_bf, preferred_element_type=jnp.float32)  # [TE, 4D]
    dst_g = jnp.dot(dst_oh, nlin_bf, preferred_element_type=jnp.float32)  # [TE, 4D]

    e_src_g = src_g[:, 0:D]           # src_gate(h)[src]
    bh_g = src_g[:, 3 * D:4 * D]      # dst_update(h)[src]   ("Bh")
    e_dst_g = dst_g[:, D:2 * D]       # dst_gate(h)[dst]

    m = e_src_g + e_dst_g + e_edge                          # [TE, D] f32
    sigma = jax.nn.sigmoid(m)                               # f32 (VPU/EUP path)

    # Scatter-sum to destination nodes: contract the edge axis of dst_oh directly
    # (no materialized transpose); shared LHS with a 2D-wide packed RHS.
    edge_pack = jnp.concatenate([sigma * bh_g, sigma], axis=-1).astype(jnp.bfloat16)
    acc_sc[...] += jax.lax.dot_general(
        dst_oh, edge_pack,
        dimension_numbers=(((0,), (0,)), ((), ())),
        preferred_element_type=jnp.float32)                 # [N, 2D] f32

    # Edge-side epilogue for this tile (kept in f32).
    y = _silu(_layernorm(m, ln_ref[2], ln_ref[3]))
    y_out_ref[...] = (e_tile + y).astype(y_out_ref.dtype)

    # --- node-side epilogue after the last edge tile ------------------------
    @pl.when(k == pl.num_programs(0) - 1)
    def _finalize():
        acc = acc_sc[...]
        h_agg = acc[:, 0:D] / (acc[:, D:2 * D] + 1e-6)
        src_upd = nlin_sc[...][:, 2 * D:3 * D]
        x = _silu(_layernorm(src_upd + h_agg, ln_ref[0], ln_ref[1]))
        x_out_ref[...] = (node_ref[...].astype(jnp.float32) + x).astype(x_out_ref.dtype)


def _round_up(x, m):
    return (x + m - 1) // m * m


@functools.partial(jax.jit, static_argnames=("tile_e",))
def edge_gated_conv(node_feats, edge_feats, src_oh, dst_oh, W, B, LN, *, tile_e=256):
    N, D = node_feats.shape
    E, _ = edge_feats.shape

    # Edge-tile size: multiple of 16 (bf16 sublane packing), clamped to padded E.
    tile_e = max(16, min(tile_e, _round_up(E, 16)))
    assert tile_e % 16 == 0
    E_pad = _round_up(E, tile_e)
    n_tiles = E_pad // tile_e
    pad_e = E_pad - E

    # Zero-padded edges have all-zero one-hot rows -> contribute nothing to the
    # scatter; their y rows are sliced off below.
    edge_p = jnp.pad(edge_feats, ((0, pad_e), (0, 0)))
    src_oh_p = jnp.pad(src_oh.astype(jnp.bfloat16), ((0, pad_e), (0, 0)))
    dst_oh_p = jnp.pad(dst_oh.astype(jnp.bfloat16), ((0, pad_e), (0, 0)))

    # Fused, pre-transposed node weights: columns [src_gate|dst_gate|src_update|dst_update],
    # stored [in, out] so the kernel never transposes.
    Wn = jnp.concatenate([W[0].T, W[1].T, W[3].T, W[4].T], axis=1)   # [D, 4D]
    Bn = jnp.concatenate([B[0], B[1], B[3], B[4]], axis=1)           # [1, 4D]
    We = W[2].T                                                      # [D, D]
    Be = B[2]                                                        # [1, D]

    # --- VMEM budget & cost estimate ---------------------------------------
    f32b, bf16b = 4, 2
    tile_io = tile_e * D * f32b * 2 + 2 * tile_e * N * bf16b          # edge in/out + one-hots
    resident = (2 * N * D * f32b                                       # node in + x out
                + (4 * D * D + 4 * D + D * D + D + 4 * D) * f32b       # weights/biases/LN
                + N * 4 * D * (f32b + bf16b) + N * 2 * D * f32b)       # scratch
    vmem_limit = int(min(48 << 20,
                         max(8 << 20, 2 * (2 * tile_io + resident) + (1 << 20))))

    flops = int(2 * N * D * 4 * D            # fused node linears
                + 2 * E_pad * D * D          # edge gate
                + 2 * 2 * E_pad * N * 4 * D  # src/dst gathers
                + 2 * E_pad * N * 2 * D)     # scatter
    transcendentals = int(2 * E_pad * D + 2 * N * D)
    bytes_accessed = int(f32b * N * D * 2 + f32b * E_pad * D * 2
                         + bf16b * E_pad * N * 2
                         + f32b * (4 * D * D + D * D + 9 * D))

    grid_spec = pltpu.PrefetchScalarGridSpec(
        num_scalar_prefetch=0,
        grid=(n_tiles,),
        in_specs=[
            pl.BlockSpec((N, D), lambda k: (0, 0)),           # node_feats (resident)
            pl.BlockSpec((tile_e, D), lambda k: (k, 0)),      # edge tile
            pl.BlockSpec((tile_e, N), lambda k: (k, 0)),      # src one-hot tile (bf16)
            pl.BlockSpec((tile_e, N), lambda k: (k, 0)),      # dst one-hot tile (bf16)
            pl.BlockSpec((D, 4 * D), lambda k: (0, 0)),       # fused node weights
            pl.BlockSpec((1, 4 * D), lambda k: (0, 0)),       # fused node biases
            pl.BlockSpec((D, D), lambda k: (0, 0)),           # edge_gate weight
            pl.BlockSpec((1, D), lambda k: (0, 0)),           # edge_gate bias
            pl.BlockSpec((4, 1, D), lambda k: (0, 0, 0)),     # layernorm params
        ],
        out_specs=[
            pl.BlockSpec((N, D), lambda k: (0, 0)),           # x_out (resident accumulator)
            pl.BlockSpec((tile_e, D), lambda k: (k, 0)),      # y_out tile
        ],
        scratch_shapes=[
            pltpu.VMEM((N, 4 * D), jnp.float32),
            pltpu.VMEM((N, 4 * D), jnp.bfloat16),
            pltpu.VMEM((N, 2 * D), jnp.float32),
        ],
    )

    x_out, y_out = pl.pallas_call(
        edge_gated_conv_kernel,
        out_shape=(
            jax.ShapeDtypeStruct((N, D), node_feats.dtype),
            jax.ShapeDtypeStruct((E_pad, D), edge_feats.dtype),
        ),
        grid_spec=grid_spec,
        compiler_params=pltpu.CompilerParams(
            # Single edge axis carries the scatter reduction -> "arbitrary".
            dimension_semantics=("arbitrary",),
            vmem_limit_bytes=vmem_limit,
        ),
        cost_estimate=pl.CostEstimate(
            flops=flops,
            transcendentals=transcendentals,
            bytes_accessed=bytes_accessed,
        ),
    )(node_feats, edge_p, src_oh_p, dst_oh_p, Wn, Bn, We, Be, LN)

    return x_out, y_out[:E]


def _reference(node_feats, edge_feats, src_idx, dst_idx, W, B, LN):
    """Pure-JAX f32 reference mirroring the PyTorch/DGL semantics."""
    def lin(i, x):
        return x @ W[i].T + B[i, 0]

    e_src = lin(0, node_feats)
    e_dst = lin(1, node_feats)
    e_edge = lin(2, edge_feats)
    src_upd = lin(3, node_feats)
    bh = lin(4, node_feats)

    m = e_src[src_idx] + e_dst[dst_idx] + e_edge
    sigma = jax.nn.sigmoid(m)
    sum_sigma_h = jnp.zeros_like(node_feats).at[dst_idx].add(sigma * bh[src_idx])
    sum_sigma = jnp.zeros_like(node_feats).at[dst_idx].add(sigma)
    h_agg = sum_sigma_h / (sum_sigma + 1e-6)

    x = src_upd + h_agg
    x = _silu(_layernorm(x, LN[0, 0], LN[1, 0]))
    y = _silu(_layernorm(m, LN[2, 0], LN[3, 0]))
    return node_feats + x, edge_feats + y


if __name__ == "__main__":
    key = jax.random.PRNGKey(0)
    N, D = 16, 32
    keys = jax.random.split(key, 8)

    # Synthetic parameters (nn.Linear / nn.LayerNorm shapes).
    W = 0.1 * jax.random.normal(keys[4], (5, D, D), dtype=jnp.float32)
    B = 0.05 * jax.random.normal(keys[5], (5, 1, D), dtype=jnp.float32)
    gamma_nodes = 1.0 + 0.01 * jnp.arange(D, dtype=jnp.float32)
    beta_nodes = 0.01 * jnp.arange(D, dtype=jnp.float32)
    gamma_edges = 1.0 - 0.01 * jnp.arange(D, dtype=jnp.float32)
    beta_edges = -0.01 * jnp.arange(D, dtype=jnp.float32)
    LN = jnp.stack([gamma_nodes, beta_nodes, gamma_edges, beta_edges])[:, None, :]  # [4,1,D]

    for E in (48, 40):  # E=40 exercises the edge-padding path (pads to 48)
        node_feats = jax.random.normal(keys[0], (N, D), dtype=jnp.float32)
        edge_feats = jax.random.normal(keys[1], (E, D), dtype=jnp.float32)
        src_idx = jax.random.randint(keys[2], (E,), 0, N)
        dst_idx = jax.random.randint(keys[3], (E,), 0, N)
        src_oh = jax.nn.one_hot(src_idx, N, dtype=jnp.float32)  # [E, N]
        dst_oh = jax.nn.one_hot(dst_idx, N, dtype=jnp.float32)  # [E, N]

        x_out, y_out = edge_gated_conv(node_feats, edge_feats, src_oh, dst_oh,
                                       W, B, LN, tile_e=16)
        jax.block_until_ready((x_out, y_out))

        x_ref, y_ref = _reference(node_feats, edge_feats, src_idx, dst_idx, W, B, LN)
        # bf16 MXU gather/scatter operands (f32 accumulation) -> small drift vs f32 ref.
        assert jnp.allclose(x_out, x_ref, atol=5e-2, rtol=5e-2), "node output mismatch"
        assert jnp.allclose(y_out, y_ref, atol=5e-2, rtol=5e-2), "edge output mismatch"

    print("KERNEL_OK")
</pallas_src>

<mosaic_0001>
module attributes {stable_mosaic.version = 11 : i64} {
  func.func @edge_gated_conv_kernel(%arg0: i32, %arg1: memref<16x32xf32, #tpu.memory_space<vmem>>, %arg2: memref<16x32xf32, #tpu.memory_space<vmem>>, %arg3: memref<16x16xbf16, #tpu.memory_space<vmem>>, %arg4: memref<16x16xbf16, #tpu.memory_space<vmem>>, %arg5: memref<32x128xf32, #tpu.memory_space<vmem>>, %arg6: memref<1x128xf32, #tpu.memory_space<vmem>>, %arg7: memref<32x32xf32, #tpu.memory_space<vmem>>, %arg8: memref<1x32xf32, #tpu.memory_space<vmem>>, %arg9: memref<4x1x32xf32, #tpu.memory_space<vmem>>, %arg10: memref<16x32xf32, #tpu.memory_space<vmem>>, %arg11: memref<16x32xf32, #tpu.memory_space<vmem>>, %arg12: memref<16x128xf32, #tpu.memory_space<vmem>>, %arg13: memref<16x128xbf16, #tpu.memory_space<vmem>>, %arg14: memref<16x64xf32, #tpu.memory_space<vmem>>) attributes {dimension_semantics = [#tpu.dimension_semantics<arbitrary>], iteration_bounds = array<i64: 3>, scalar_prefetch = 0 : i64, scratch_operands = 3 : i64, tpu.core_type = #tpu.core_type<tc>, window_params = [{pipeline_mode = #tpu.pipeline_mode<synchronous>, transform_indices = @transform_0, window_bounds = array<i64: 16, 32>}, {transform_indices = @transform_1, window_bounds = array<i64: 16, 32>}, {transform_indices = @transform_2, window_bounds = array<i64: 16, 16>}, {transform_indices = @transform_3, window_bounds = array<i64: 16, 16>}, {pipeline_mode = #tpu.pipeline_mode<synchronous>, transform_indices = @transform_4, window_bounds = array<i64: 32, 128>}, {pipeline_mode = #tpu.pipeline_mode<synchronous>, transform_indices = @transform_5, window_bounds = array<i64: 1, 128>}, {pipeline_mode = #tpu.pipeline_mode<synchronous>, transform_indices = @transform_6, window_bounds = array<i64: 32, 32>}, {pipeline_mode = #tpu.pipeline_mode<synchronous>, transform_indices = @transform_7, window_bounds = array<i64: 1, 32>}, {pipeline_mode = #tpu.pipeline_mode<synchronous>, transform_indices = @transform_8, window_bounds = array<i64: 4, 1, 32>}, {pipeline_mode = #tpu.pipeline_mode<synchronous>, transform_indices = @transform_9, window_bounds = array<i64: 16, 32>}, {transform_indices = @transform_10, window_bounds = array<i64: 16, 32>}]} {
    %c0_i32 = arith.constant 0 : i32
    %0 = arith.cmpi eq, %arg0, %c0_i32 : i32
    %1 = arith.extui %0 : i1 to i32
    %c0_i32_0 = arith.constant 0 : i32
    %2 = arith.cmpi ne, %1, %c0_i32_0 : i32
    scf.if %2 {
      %c0_33 = arith.constant 0 : index
      %c0_34 = arith.constant 0 : index
      %68 = vector.load %arg1[%c0_33, %c0_34] : memref<16x32xf32, #tpu.memory_space<vmem>>, vector<16x32xf32>
      %c0_35 = arith.constant 0 : index
      %c0_36 = arith.constant 0 : index
      %69 = vector.load %arg5[%c0_35, %c0_36] : memref<32x128xf32, #tpu.memory_space<vmem>>, vector<32x128xf32>
      %cst_37 = arith.constant dense<0.000000e+00> : vector<16x128xf32>
      %70 = tpu.matmul %68, %69, %cst_37 {dimension_numbers = #tpu.dot_dimension_numbers<[1], [0], [0], [1], [0, 0, 1, 1], [], []>} : vector<16x32xf32>, vector<32x128xf32>, vector<16x128xf32> -> vector<16x128xf32>
      %c0_38 = arith.constant 0 : index
      %c0_39 = arith.constant 0 : index
      %71 = vector.load %arg6[%c0_38, %c0_39] : memref<1x128xf32, #tpu.memory_space<vmem>>, vector<1x128xf32>
      %72 = vector.broadcast %71 : vector<1x128xf32> to vector<16x128xf32>
      %73 = arith.addf %70, %72 : vector<16x128xf32>
      %c0_40 = arith.constant 0 : index
      %c0_41 = arith.constant 0 : index
      %74 = vector.load %arg12[%c0_40, %c0_41] : memref<16x128xf32, #tpu.memory_space<vmem>>, vector<16x128xf32>
      tpu.vector_store %arg12[%c0_40, %c0_41], %73 {strides = array<i32>} : memref<16x128xf32, #tpu.memory_space<vmem>>, vector<16x128xf32>,
      %75 = arith.truncf %73 : vector<16x128xf32> to vector<16x128xbf16>
      %c0_42 = arith.constant 0 : index
      %c0_43 = arith.constant 0 : index
      %76 = vector.load %arg13[%c0_42, %c0_43] : memref<16x128xbf16, #tpu.memory_space<vmem>>, vector<16x128xbf16>
      tpu.vector_store %arg13[%c0_42, %c0_43], %75 {strides = array<i32>} : memref<16x128xbf16, #tpu.memory_space<vmem>>, vector<16x128xbf16>,
      %cst_44 = arith.constant 0.000000e+00 : f32
      %77 = vector.broadcast %cst_44 : f32 to vector<16x64xf32>
      %c0_45 = arith.constant 0 : index
      %c0_46 = arith.constant 0 : index
      %78 = vector.load %arg14[%c0_45, %c0_46] : memref<16x64xf32, #tpu.memory_space<vmem>>, vector<16x64xf32>
      tpu.vector_store %arg14[%c0_45, %c0_46], %77 {strides = array<i32>} : memref<16x64xf32, #tpu.memory_space<vmem>>, vector<16x64xf32>,
    } else {
    }
    %c0 = arith.constant 0 : index
    %c0_1 = arith.constant 0 : index
    %3 = vector.load %arg2[%c0, %c0_1] : memref<16x32xf32, #tpu.memory_space<vmem>>, vector<16x32xf32>
    %c0_2 = arith.constant 0 : index
    %c0_3 = arith.constant 0 : index
    %4 = vector.load %arg7[%c0_2, %c0_3] : memref<32x32xf32, #tpu.memory_space<vmem>>, vector<32x32xf32>
    %cst = arith.constant dense<0.000000e+00> : vector<16x32xf32>
    %5 = tpu.matmul %3, %4, %cst {dimension_numbers = #tpu.dot_dimension_numbers<[1], [0], [0], [1], [0, 0, 1, 1], [], []>} : vector<16x32xf32>, vector<32x32xf32>, vector<16x32xf32> -> vector<16x32xf32>
    %c0_4 = arith.constant 0 : index
    %c0_5 = arith.constant 0 : index
    %6 = vector.load %arg8[%c0_4, %c0_5] : memref<1x32xf32, #tpu.memory_space<vmem>>, vector<1x32xf32>
    %7 = vector.broadcast %6 : vector<1x32xf32> to vector<16x32xf32>
    %8 = arith.addf %5, %7 : vector<16x32xf32>
    %c0_6 = arith.constant 0 : index
    %c0_7 = arith.constant 0 : index
    %9 = vector.load %arg13[%c0_6, %c0_7] : memref<16x128xbf16, #tpu.memory_space<vmem>>, vector<16x128xbf16>
    %c0_8 = arith.constant 0 : index
    %c0_9 = arith.constant 0 : index
    %10 = vector.load %arg3[%c0_8, %c0_9] : memref<16x16xbf16, #tpu.memory_space<vmem>>, vector<16x16xbf16>
    %c0_10 = arith.constant 0 : index
    %c0_11 = arith.constant 0 : index
    %11 = vector.load %arg4[%c0_10, %c0_11] : memref<16x16xbf16, #tpu.memory_space<vmem>>, vector<16x16xbf16>
    %cst_12 = arith.constant dense<0.000000e+00> : vector<16x128xf32>
    %12 = tpu.matmul %10, %9, %cst_12 {dimension_numbers = #tpu.dot_dimension_numbers<[1], [0], [0], [1], [0, 0, 1, 1], [], []>} : vector<16x16xbf16>, vector<16x128xbf16>, vector<16x128xf32> -> vector<16x128xf32>
    %cst_13 = arith.constant dense<0.000000e+00> : vector<16x128xf32>
    %13 = tpu.matmul %11, %9, %cst_13 {dimension_numbers = #tpu.dot_dimension_numbers<[1], [0], [0], [1], [0, 0, 1, 1], [], []>} : vector<16x16xbf16>, vector<16x128xbf16>, vector<16x128xf32> -> vector<16x128xf32>
    %14 = vector.extract_strided_slice %12 {offsets = [0, 0], sizes = [16, 32], strides = [1, 1]} : vector<16x128xf32> to vector<16x32xf32>
    %15 = vector.extract_strided_slice %12 {offsets = [0, 96], sizes = [16, 32], strides = [1, 1]} : vector<16x128xf32> to vector<16x32xf32>
    %16 = vector.extract_strided_slice %13 {offsets = [0, 32], sizes = [16, 32], strides = [1, 1]} : vector<16x128xf32> to vector<16x32xf32>
    %17 = arith.addf %14, %16 : vector<16x32xf32>
    %18 = arith.addf %17, %8 : vector<16x32xf32>
    %19 = arith.negf %18 : vector<16x32xf32>
    %20 = math.exp %19 : vector<16x32xf32>
    %cst_14 = arith.constant 1.000000e+00 : f32
    %21 = vector.broadcast %cst_14 : f32 to vector<16x32xf32>
    %22 = arith.addf %21, %20 : vector<16x32xf32>
    %23 = arith.divf %21, %22 : vector<16x32xf32>
    %24 = arith.mulf %23, %15 : vector<16x32xf32>
    %25 = tpu.concatenate %24, %23 in 1 : vector<16x32xf32>, vector<16x32xf32> -> vector<16x64xf32>
    %26 = arith.truncf %25 : vector<16x64xf32> to vector<16x64xbf16>
    %c0_15 = arith.constant 0 : index
    %c0_16 = arith.constant 0 : index
    %27 = vector.load %arg14[%c0_15, %c0_16] : memref<16x64xf32, #tpu.memory_space<vmem>>, vector<16x64xf32>
    %cst_17 = arith.constant dense<0.000000e+00> : vector<16x64xf32>
    %28 = tpu.matmul %11, %26, %cst_17 {dimension_numbers = #tpu.dot_dimension_numbers<[0], [0], [1], [1], [0, 1, 1, 1], [], []>} : vector<16x16xbf16>, vector<16x64xbf16>, vector<16x64xf32> -> vector<16x64xf32>
    %29 = arith.addf %27, %28 : vector<16x64xf32>
    %c0_18 = arith.constant 0 : index
    %c0_19 = arith.constant 0 : index
    %30 = vector.load %arg14[%c0_18, %c0_19] : memref<16x64xf32, #tpu.memory_space<vmem>>, vector<16x64xf32>
    tpu.vector_store %arg14[%c0_18, %c0_19], %29 {strides = array<i32>} : memref<16x64xf32, #tpu.memory_space<vmem>>, vector<16x64xf32>,
    %c2 = arith.constant 2 : index
    %c0_20 = arith.constant 0 : index
    %c0_21 = arith.constant 0 : index
    %31 = vector.load %arg9[%c2, %c0_20, %c0_21] : memref<4x1x32xf32, #tpu.memory_space<vmem>>, vector<1x1x32xf32>
    %32 = vector.shape_cast %31 : vector<1x1x32xf32> to vector<1x32xf32>
    %c3 = arith.constant 3 : index
    %c0_22 = arith.constant 0 : index
    %c0_23 = arith.constant 0 : index
    %33 = vector.load %arg9[%c3, %c0_22, %c0_23] : memref<4x1x32xf32, #tpu.memory_space<vmem>>, vector<1x1x32xf32>
    %34 = vector.shape_cast %33 : vector<1x1x32xf32> to vector<1x32xf32>
    %cst_24 = arith.constant dense<0.000000e+00> : vector<16xf32>
    %35 = vector.multi_reduction <add>, %18, %cst_24 [1] : vector<16x32xf32> to vector<16xf32>
    %36 = vector.shape_cast %35 : vector<16xf32> to vector<16x1xf32>
    %cst_25 = arith.constant 3.200000e+01 : f32
    %37 = vector.broadcast %cst_25 : f32 to vector<16x1xf32>
    %38 = arith.divf %36, %37 : vector<16x1xf32>
    %39 = vector.broadcast %38 : vector<16x1xf32> to vector<16x32xf32>
    %40 = arith.subf %18, %39 : vector<16x32xf32>
    %41 = arith.mulf %40, %40 : vector<16x32xf32>
    %cst_26 = arith.constant dense<0.000000e+00> : vector<16xf32>
    %42 = vector.multi_reduction <add>, %41, %cst_26 [1] : vector<16x32xf32> to vector<16xf32>
    %43 = vector.shape_cast %42 : vector<16xf32> to vector<16x1xf32>
    %cst_27 = arith.constant 3.200000e+01 : f32
    %44 = vector.broadcast %cst_27 : f32 to vector<16x1xf32>
    %45 = arith.divf %43, %44 : vector<16x1xf32>
    %46 = vector.broadcast %38 : vector<16x1xf32> to vector<16x32xf32>
    %47 = arith.subf %18, %46 : vector<16x32xf32>
    %cst_28 = arith.constant 9.99999974E-6 : f32
    %48 = vector.broadcast %cst_28 : f32 to vector<16x1xf32>
    %49 = arith.addf %45, %48 : vector<16x1xf32>
    %50 = math.rsqrt %49 : vector<16x1xf32>
    %51 = vector.broadcast %50 : vector<16x1xf32> to vector<16x32xf32>
    %52 = arith.mulf %47, %51 : vector<16x32xf32>
    %53 = vector.broadcast %32 : vector<1x32xf32> to vector<16x32xf32>
    %54 = arith.mulf %52, %53 : vector<16x32xf32>
    %55 = vector.broadcast %34 : vector<1x32xf32> to vector<16x32xf32>
    %56 = arith.addf %54, %55 : vector<16x32xf32>
    %57 = arith.negf %56 : vector<16x32xf32>
    %58 = math.exp %57 : vector<16x32xf32>
    %cst_29 = arith.constant 1.000000e+00 : f32
    %59 = vector.broadcast %cst_29 : f32 to vector<16x32xf32>
    %60 = arith.addf %59, %58 : vector<16x32xf32>
    %61 = arith.divf %59, %60 : vector<16x32xf32>
    %62 = arith.mulf %56, %61 : vector<16x32xf32>
    %63 = arith.addf %3, %62 : vector<16x32xf32>
    %c0_30 = arith.constant 0 : index
    %c0_31 = arith.constant 0 : index
    %64 = vector.load %arg11[%c0_30, %c0_31] : memref<16x32xf32, #tpu.memory_space<vmem>>, vector<16x32xf32>
    tpu.vector_store %arg11[%c0_30, %c0_31], %63 {strides = array<i32>} : memref<16x32xf32, #tpu.memory_space<vmem>>, vector<16x32xf32>,
    %c2_i32 = arith.constant 2 : i32
    %65 = arith.cmpi eq, %arg0, %c2_i32 : i32
    %66 = arith.extui %65 : i1 to i32
    %c0_i32_32 = arith.constant 0 : i32
    %67 = arith.cmpi ne, %66, %c0_i32_32 : i32
    scf.if %67 {
      %c0_33 = arith.constant 0 : index
      %c0_34 = arith.constant 0 : index
      %68 = vector.load %arg14[%c0_33, %c0_34] : memref<16x64xf32, #tpu.memory_space<vmem>>, vector<16x64xf32>
      %69 = vector.extract_strided_slice %68 {offsets = [0, 0], sizes = [16, 32], strides = [1, 1]} : vector<16x64xf32> to vector<16x32xf32>
      %70 = vector.extract_strided_slice %68 {offsets = [0, 32], sizes = [16, 32], strides = [1, 1]} : vector<16x64xf32> to vector<16x32xf32>
      %cst_35 = arith.constant 9.99999997E-7 : f32
      %71 = vector.broadcast %cst_35 : f32 to vector<16x32xf32>
      %72 = arith.addf %70, %71 : vector<16x32xf32>
      %73 = arith.divf %69, %72 : vector<16x32xf32>
      %c0_36 = arith.constant 0 : index
      %c0_37 = arith.constant 0 : index
      %74 = vector.load %arg12[%c0_36, %c0_37] : memref<16x128xf32, #tpu.memory_space<vmem>>, vector<16x128xf32>
      %75 = vector.extract_strided_slice %74 {offsets = [0, 64], sizes = [16, 32], strides = [1, 1]} : vector<16x128xf32> to vector<16x32xf32>
      %76 = arith.addf %75, %73 : vector<16x32xf32>
      %c0_38 = arith.constant 0 : index
      %c0_39 = arith.constant 0 : index
      %c0_40 = arith.constant 0 : index
      %77 = vector.load %arg9[%c0_38, %c0_39, %c0_40] : memref<4x1x32xf32, #tpu.memory_space<vmem>>, vector<1x1x32xf32>
      %78 = vector.shape_cast %77 : vector<1x1x32xf32> to vector<1x32xf32>
      %c1 = arith.constant 1 : index
      %c0_41 = arith.constant 0 : index
      %c0_42 = arith.constant 0 : index
      %79 = vector.load %arg9[%c1, %c0_41, %c0_42] : memref<4x1x32xf32, #tpu.memory_space<vmem>>, vector<1x1x32xf32>
      %80 = vector.shape_cast %79 : vector<1x1x32xf32> to vector<1x32xf32>
      %cst_43 = arith.constant dense<0.000000e+00> : vector<16xf32>
      %81 = vector.multi_reduction <add>, %76, %cst_43 [1] : vector<16x32xf32> to vector<16xf32>
      %82 = vector.shape_cast %81 : vector<16xf32> to vector<16x1xf32>
      %cst_44 = arith.constant 3.200000e+01 : f32
      %83 = vector.broadcast %cst_44 : f32 to vector<16x1xf32>
      %84 = arith.divf %82, %83 : vector<16x1xf32>
      %85 = vector.broadcast %84 : vector<16x1xf32> to vector<16x32xf32>
      %86 = arith.subf %76, %85 : vector<16x32xf32>
      %87 = arith.mulf %86, %86 : vector<16x32xf32>
      %cst_45 = arith.constant dense<0.000000e+00> : vector<16xf32>
      %88 = vector.multi_reduction <add>, %87, %cst_45 [1] : vector<16x32xf32> to vector<16xf32>
      %89 = vector.shape_cast %88 : vector<16xf32> to vector<16x1xf32>
      %cst_46 = arith.constant 3.200000e+01 : f32
      %90 = vector.broadcast %cst_46 : f32 to vector<16x1xf32>
      %91 = arith.divf %89, %90 : vector<16x1xf32>
      %92 = vector.broadcast %84 : vector<16x1xf32> to vector<16x32xf32>
      %93 = arith.subf %76, %92 : vector<16x32xf32>
      %cst_47 = arith.constant 9.99999974E-6 : f32
      %94 = vector.broadcast %cst_47 : f32 to vector<16x1xf32>
      %95 = arith.addf %91, %94 : vector<16x1xf32>
      %96 = math.rsqrt %95 : vector<16x1xf32>
      %97 = vector.broadcast %96 : vector<16x1xf32> to vector<16x32xf32>
      %98 = arith.mulf %93, %97 : vector<16x32xf32>
      %99 = vector.broadcast %78 : vector<1x32xf32> to vector<16x32xf32>
      %100 = arith.mulf %98, %99 : vector<16x32xf32>
      %101 = vector.broadcast %80 : vector<1x32xf32> to vector<16x32xf32>
      %102 = arith.addf %100, %101 : vector<16x32xf32>
      %103 = arith.negf %102 : vector<16x32xf32>
      %104 = math.exp %103 : vector<16x32xf32>
      %cst_48 = arith.constant 1.000000e+00 : f32
      %105 = vector.broadcast %cst_48 : f32 to vector<16x32xf32>
      %106 = arith.addf %105, %104 : vector<16x32xf32>
      %107 = arith.divf %105, %106 : vector<16x32xf32>
      %108 = arith.mulf %102, %107 : vector<16x32xf32>
      %c0_49 = arith.constant 0 : index
      %c0_50 = arith.constant 0 : index
      %109 = vector.load %arg1[%c0_49, %c0_50] : memref<16x32xf32, #tpu.memory_space<vmem>>, vector<16x32xf32>
      %110 = arith.addf %109, %108 : vector<16x32xf32>
      %c0_51 = arith.constant 0 : index
      %c0_52 = arith.constant 0 : index
      %111 = vector.load %arg10[%c0_51, %c0_52] : memref<16x32xf32, #tpu.memory_space<vmem>>, vector<16x32xf32>
      tpu.vector_store %arg10[%c0_51, %c0_52], %110 {strides = array<i32>} : memref<16x32xf32, #tpu.memory_space<vmem>>, vector<16x32xf32>,
    } else {
    }
    return
  }
  func.func @transform_0(%arg0: i32) -> (i32, i32) {
    %c0_i32 = arith.constant 0 : i32
    %c0_i32_0 = arith.constant 0 : i32
    %c0_i32_1 = arith.constant 0 : i32
    return %c0_i32, %c0_i32_0 : i32, i32
  }
  func.func @transform_1(%arg0: i32) -> (i32, i32) {
    %c0_i32 = arith.constant 0 : i32
    %c0_i32_0 = arith.constant 0 : i32
    return %arg0, %c0_i32 : i32, i32
  }
  func.func @transform_2(%arg0: i32) -> (i32, i32) {
    %c0_i32 = arith.constant 0 : i32
    %c0_i32_0 = arith.constant 0 : i32
    return %arg0, %c0_i32 : i32, i32
  }
  func.func @transform_3(%arg0: i32) -> (i32, i32) {
    %c0_i32 = arith.constant 0 : i32
    %c0_i32_0 = arith.constant 0 : i32
    return %arg0, %c0_i32 : i32, i32
  }
  func.func @transform_4(%arg0: i32) -> (i32, i32) {
    %c0_i32 = arith.constant 0 : i32
    %c0_i32_0 = arith.constant 0 : i32
    %c0_i32_1 = arith.constant 0 : i32
    return %c0_i32, %c0_i32_0 : i32, i32
  }
  func.func @transform_5(%arg0: i32) -> (i32, i32) {
    %c0_i32 = arith.constant 0 : i32
    %c0_i32_0 = arith.constant 0 : i32
    %c0_i32_1 = arith.constant 0 : i32
    return %c0_i32, %c0_i32_0 : i32, i32
  }
  func.func @transform_6(%arg0: i32) -> (i32, i32) {
    %c0_i32 = arith.constant 0 : i32
    %c0_i32_0 = arith.constant 0 : i32
    %c0_i32_1 = arith.constant 0 : i32
    return %c0_i32, %c0_i32_0 : i32, i32
  }
  func.func @transform_7(%arg0: i32) -> (i32, i32) {
    %c0_i32 = arith.constant 0 : i32
    %c0_i32_0 = arith.constant 0 : i32
    %c0_i32_1 = arith.constant 0 : i32
    return %c0_i32, %c0_i32_0 : i32, i32
  }
  func.func @transform_8(%arg0: i32) -> (i32, i32, i32) {
    %c0_i32 = arith.constant 0 : i32
    %c0_i32_0 = arith.constant 0 : i32
    %c0_i32_1 = arith.constant 0 : i32
    %c0_i32_2 = arith.constant 0 : i32
    return %c0_i32, %c0_i32_0, %c0_i32_1 : i32, i32, i32
  }
  func.func @transform_9(%arg0: i32) -> (i32, i32) {
    %c0_i32 = arith.constant 0 : i32
    %c0_i32_0 = arith.constant 0 : i32
    %c0_i32_1 = arith.constant 0 : i32
    return %c0_i32, %c0_i32_0 : i32, i32
  }
  func.func @transform_10(%arg0: i32) -> (i32, i32) {
    %c0_i32 = arith.constant 0 : i32
    %c0_i32_0 = arith.constant 0 : i32
    return %arg0, %c0_i32 : i32, i32
  }
}

</mosaic_0001>

<bundles_post_ra>
// kernel: edge_gated_conv.1
= control target key start
LH: loop header
LB: loop body
LE: loop exit
PB: predicated region body
PF: predicated region fallthrough
CT: control target
= control target key end

     0   :  { %16 = vsyncpa [#allocation6], 0  ;;  %s1311_s13 = smov 0   ;;  %s1470_s0 = inlined_call_operand.vmem [shape: f32[16,32], index: 0, kind: input, shape index: {}]   ;;  %s1471_s1 = inlined_call_operand.vmem [shape: f32[48,32], index: 1, kind: input, shape index: {}]   ;;  %s1472_s2 = inlined_call_operand.vmem [shape: bf16[48,16], index: 2, kind: input, shape index: {}]   ;;  %s1473_s3 = inlined_call_operand.vmem [shape: bf16[48,16], index: 3, kind: input, shape index: {}]   ;;  %s1474_s4 = inlined_call_operand.vmem [shape: f32[32,128], index: 4, kind: input, shape index: {}]   ;;  %s1475_s5 = inlined_call_operand.vmem [shape: f32[1,128], index: 5, kind: input, shape index: {}]   ;;  %s1476_s6 = inlined_call_operand.vmem [shape: f32[32,32], index: 6, kind: input, shape index: {}]   ;;  %s1477_s7 = inlined_call_operand.vmem [shape: f32[1,32], index: 7, kind: input, shape index: {}]   ;;  %s1478_s8 = inlined_call_operand.vmem [shape: f32[4,1,32], index: 8, kind: input, shape index: {}]   ;;  %s1479_s9 = inlined_call_operand.hbm [shape: f32[16,32], index: 9, kind: output, shape index: {0}]   ;;  %s1480_s10 = inlined_call_operand.vmem [shape: f32[48,32], index: 10, kind: output, shape index: {1}]  }
   0x1 LB: > { %s1317_s14 = sadd.s32 4294967295, %s1245_s13   ;;  %p1079_p0 = scmp.ge.s32.totalorder %s1245_s13, 1  ;;  %s1245_s13 = sphi %s1311_s13, %s22_s13  }
   0x2   : > { %p334_p1 = scmp.lt.s32.totalorder %s1245_s13, 4 }
   0x4   : > { %p335_p2 = pnand %p1079_p0, %p334_p1 }
   0x5   : > { %s1080_s15 = sshll.u32 (!%p335_p2), %s1317_s14, 1  ;;  %p1088_p4 = scmp.ne.s32.totalorder (!%p335_p2), %s1317_s14, 0 }
   0x6   : > { %338 = sbr.rel (%p335_p2) target bundleno = 1663 (0x67f), region = 56  ;;  %p383_p3 = scmp.lt.s32.totalorder (!%p335_p2), %s1080_s15, 5 }
   0xb   : > { %s1482_s15 = smov (!%p383_p3, %s1080_s15), 5  ;;  %410 = sbr.rel (%p1088_p4) target bundleno = 155 (0x9b), region = 60 }
   0xc   : > { %s1081_s16 = sshll.u32 %s1482_s15, 3  ;;  %s1083_s17 = sshll.u32 %s1482_s15, 2 }
   0xd   : > { %s1325_s20 = scalar_lea.vmem %s1471_s1, %s1081_s16  ;;  %s1330_s23 = scalar_lea.vmem %s1472_s2, %s1083_s17 }
   0xe   : > { %s1335_s26 = scalar_lea.vmem %s1473_s3, %s1083_s17  ;;  %s1340_s29 = scalar_lea.vmem %s1480_s10, %s1081_s16 }
  0x10   : > { %v416_v0 = vld [vmem:[%s1474_s4 + $0x18] sm:$0xff]  ;;  %v415_v1 = vld [vmem:[%s1474_s4 + $0x10] sm:$0xff]  ;;  %v414_v2 = vld [vmem:[%s1474_s4 + $0x8] sm:$0xff]  ;;  %vm421_vm0 = vcmask 261120   ;;  %vm457_vm1 = vcmask 523264   ;;  %v1247_v6 = vmov 0.0  }
  0x11   : > { %440 = vmatpush.msra.mxu0 %v416_v0  ;;  %1130 = vmatpush.msra.mxu1 %v416_v0  ;;  %v413_v3 = vld [vmem:[%s1474_s4] sm:$0xff]  ;;  %v412_v5 = vld [vmem:[%s1470_s0 + $0x8] sm:$0xff]  ;;  %458 = vst.msk [vmem:[#allocation4] sm:$0xff] %vm457_vm1, %v1247_v6 }
  0x12   : > { %v411_v4 = vld [vmem:[%s1470_s0] sm:$0xff]  ;;  %459 = vst.msk [vmem:[#allocation4 + $0x8] sm:$0xff] %vm457_vm1, %v1247_v6 }
  0x13   : > { %441 = vmatpush.msra.mxu0 %v415_v1  ;;  %1131 = vmatpush.msra.mxu1 %v415_v1  ;;  %v1158_v7 = vld [vmem:[%s1475_s5] ss:$0 sm:$0xff] }
  0x15   : > { %442 = vmatpush.msra.mxu0 %v414_v2  ;;  %1132 = vmatpush.msra.mxu1 %v414_v2 }
  0x17   : > { %443 = vmatpush.msra.mxu0 %v413_v3  ;;  %1133 = vmatpush.msra.mxu1 %v413_v3 }
  0x18   : > { %1089 = vmatmul.msk.f32.vlgmr.msra.gmra.mxu0 %vm421_vm0, %v411_v4  ;;  %1090 = vmatmul.msk.f32.vlgmr.msra.gmra.mxu1 %vm421_vm0, %v412_v5 }
  0x95   : > { %v445_v8 = vpop.f32.mrf.mxu0  ;;  %v448_v9 = vpop.f32.mrf.mxu1 }
  0x96   : > { %v446_v10 = vadd.f32 %v1158_v7, %v445_v8  ;;  %v449_v11 = vadd.f32 %v1158_v7, %v448_v9 }
  0x98   : > { %451 = vst [vmem:[#allocation2] sm:$0xff] %v446_v10  ;;  %v1128_v12 = vpack.c.bf16 %v449_v11, %v446_v10 }
  0x99   : > { %452 = vst [vmem:[#allocation2 + $0x8] sm:$0xff] %v449_v11 }
  0x9a   : > { %1129 = vst [vmem:[#allocation3] sm:$0xff] %v1128_v12  }
  0x9b PF: > { %v1365_v14 = vld [vmem:[%s1335_s26] sm:$0xff]  ;;  %v465_v16 = vld [vmem:[%s1476_s6 + $0x18] sm:$0xff]  ;;  %vm517_vm2 = vcmask 130048   ;;  %v464_v17 = vld [vmem:[%s1476_s6 + $0x10] sm:$0xff]  ;;  %vm470_vm3 = vcmask 261120   ;;  %s1248_s16 = smov 32  }
  0x9c   : > { %v1123_v15 = vld [vmem:[%s1330_s23] sm:$0xff]  ;;  %489 = vmatpush.msra.mxu0 %v465_v16  ;;  %v463_v18 = vld [vmem:[%s1476_s6 + $0x8] sm:$0xff]  ;;  %s1249_s19 = smov 96   ;;  %v1250_v2 = vmov 32.0   ;;  %p1114_p5 = scmp.ne.s32.totalorder %s1317_s14, 2 }
  0x9d   : > { %v462_v19 = vld [vmem:[%s1476_s6] sm:$0xff]  ;;  %v1389_v21 = vld [vmem:[%s1325_s20 + $0x8] sm:$0xff]  ;;  %s1251_s28 = smov (!%p1114_p5), 96  }
  0x9e   : > { %490 = vmatpush.msra.mxu0 %v464_v17  ;;  %v1384_v20 = vld [vmem:[%s1325_s20] sm:$0xff] }
  0x9f   : > { %v1164_v27 = vld [vmem:[%s1477_s7] ss:$0 sm:$0xff] }
  0xa0   : > { %491 = vmatpush.msra.mxu0 %v463_v18 }
  0xa1   : > { %v1122_v13 = vld [vmem:[#allocation3] sm:$0xff] }
  0xa2   : > { %550 = vmatpush.bf16.msra.mxu2 %v1122_v13  ;;  %528 = vmatpush.bf16.msra.mxu1 %v1122_v13 }
  0xa3   : > { %492 = vmatpush.msra.mxu0 %v462_v19 }
  0xa4   : > { %1091 = vmatmul.msk.f32.vlgmr.msra.gmra.mxu0 %vm470_vm3, %v1384_v20 }
  0xa5   : > { %1106 = vmatmul.msk.bf16.vlgmr.msra.gmra.mxu2 %vm517_vm2, %v1365_v14  ;;  %1101 = vmatmul.msk.bf16.vlgmr.msra.gmra.mxu1 %vm517_vm2, %v1123_v15 }
  0xac   : > { %1092 = vmatmul.msk.f32.gmra.mxu0 %vm470_vm3, %v1389_v21 }
 0x121   : > { %v494_v26 = vpop.f32.mrf.mxu0 }
 0x122   : > { %v530_v22 = vpop.f32.mrf.mxu1  ;;  %v495_v28 = vadd.f32 %v1164_v27, %v494_v26 }
 0x123   : > { %609 = vrot.lane.b32.xlu1 %v530_v22, %s1248_s16 }
 0x128   : > { %v552_v23 = vpop.f32.mrf.mxu2 }
 0x129   : > { %559 = vrot.lane.b32.xlu0 %v552_v23, %s1249_s19  ;;  %v497_v32 = vpop.f32.mrf.mxu0 }
 0x12a   : > { %v532_v24 = vpop.f32.mrf.mxu1  ;;  %v498_v35 = vadd.f32 %v1164_v27, %v497_v32 }
 0x12b   : > { %611 = vrot.lane.b32.xlu1 %v532_v24, %s1248_s16 }
 0x130   : > { %v554_v25 = vpop.f32.mrf.mxu2 }
 0x131   : > { %561 = vrot.lane.b32.xlu0 %v554_v25, %s1249_s19 }
 0x195   : > { %v610_v4 = vpop.permute.xlu1 %609 }
 0x19b   : > { %v560_v29 = vpop.permute.xlu0 %559 }
 0x19c   : > { %v565_v30 = vadd.f32 %v560_v29, %v530_v22 }
 0x19d   : > { %v612_v7 = vpop.permute.xlu1 %611 }
 0x19e   : > { %v1398_v31 = vadd.f32 %v565_v30, %v495_v28 }
 0x1a0   : > { %v1107_v33 = vmul.f32 -1.442695, %v1398_v31  ;;  %v673_v34 = vsel %vm470_vm3, %v1398_v31, 0.0 }
 0x1a1   : > { %674 = vadd.xlane.f32.xlu0 %v673_v34 }
 0x1a2   : > { %1167 = vpow2.f32 %v1107_v33 }
 0x1a3   : > { %v562_v36 = vpop.permute.xlu0 %561 }
 0x1a4   : > { %v566_v37 = vadd.f32 %v562_v36, %v532_v24 }
 0x1a6   : > { %v568_v38 = vadd.f32 %v566_v37, %v498_v35 }
 0x1a8   : > { %v1168_v39 = vpop.eup %1167  ;;  %v1108_v40 = vmul.f32 -1.442695, %v568_v38  ;;  %v676_v41 = vsel %vm470_vm3, %v568_v38, 0.0 }
 0x1a9   : > { %v575_v42 = vadd.f32 1.0, %v1168_v39  ;;  %677 = vadd.xlane.f32.xlu1 %v676_v41 }
 0x1aa   : > { %1169 = vpow2.f32 %v1108_v40 }
 0x1ab   : > { %1171 = vrcp.f32 %v575_v42  ;;  %vm582_vm5 = vweird.f32 %v575_v42  ;;  %v588_v53 = vand.u32 2147483648, %v575_v42  ;;  %v586_v55 = vand.u32 2147483647, %v575_v42 }
 0x1ad   : > { %v589_v60 = vor.u32 1.1754944e-38, %v588_v53  ;;  %vm587_vm10 = vcmp.eq.f32.partialorder %v586_v55, 8.507059e+37 }
 0x1b0   : > { %v1170_v43 = vpop.eup %1169 }
 0x1b1   : > { %v1172_v44 = vpop.eup %1171  ;;  %v576_v45 = vadd.f32 1.0, %v1170_v43 }
 0x1b2   : > { %v578_v46 = vmul.f32 %v1172_v44, %v575_v42  ;;  %vm583_vm4 = vweird.f32 %v1172_v44  ;;  %v1165_v42 = vld [vmem:[%s1478_s8 + $0x2] ss:$0 sm:$0xff] }
 0x1b3   : > { %1173 = vrcp.f32 %v576_v45  ;;  %v603_v54 = vand.u32 2147483648, %v576_v45  ;;  %v601_v57 = vand.u32 2147483647, %v576_v45  ;;  %vm584_vm7 = vmor %vm582_vm5, %vm583_vm4  ;;  %vm597_vm8 = vweird.f32 %v576_v45 }
 0x1b4   : > { %v579_v47 = vsub.f32 1.0, %v578_v46  ;;  %1175 = vrcp.f32 %v1250_v2 }
 0x1b5   : > { %v604_v61 = vor.u32 1.1754944e-38, %v603_v54  ;;  %vm602_vm11 = vcmp.eq.f32.partialorder %v601_v57, 8.507059e+37 }
 0x1b6   : > { %v580_v48 = vmul.f32 %v1172_v44, %v579_v47 }
 0x1b8   : > { %v581_v51 = vadd.f32 %v1172_v44, %v580_v48 }
 0x1b9   : > { %v1174_v49 = vpop.eup %1173 }
 0x1ba   : > { %v593_v50 = vmul.f32 %v1174_v49, %v576_v45  ;;  %vm598_vm6 = vweird.f32 %v1174_v49  ;;  %v585_v58 = vsel %vm584_vm7, %v1172_v44, %v581_v51  ;;  %v1176_v3 = vpop.eup %1175  ;;  %v1166_v44 = vld [vmem:[%s1478_s8 + $0x3] ss:$0 sm:$0xff] }
 0x1bb   : > { %vm599_vm9 = vmor %vm597_vm8, %vm598_vm6  ;;  %v590_v63 = vsel %vm587_vm10, %v589_v60, %v585_v58  ;;  %v680_v5 = vmul.f32 32.0, %v1176_v3  ;;  %vm684_vm12 = vweird.f32 %v1176_v3 }
 0x1bc   : > { %v594_v52 = vsub.f32 1.0, %v593_v50  ;;  %v615_v15 = vmul.f32 %v610_v4, %v590_v63 }
 0x1bd   : > { %v681_v6 = vsub.f32 1.0, %v680_v5 }
 0x1be   : > { %v595_v56 = vmul.f32 %v1174_v49, %v594_v52 }
 0x1bf   : > { %v682_v8 = vmul.f32 %v1176_v3, %v681_v6 }
 0x1c0   : > { %v596_v59 = vadd.f32 %v1174_v49, %v595_v56 }
 0x1c1   : > { %v683_v9 = vadd.f32 %v1176_v3, %v682_v8 }
 0x1c2   : > { %v600_v62 = vsel %vm599_vm9, %v1174_v49, %v596_v59 }
 0x1c3   : > { %v605_v0 = vsel %vm602_vm11, %v604_v61, %v600_v62  ;;  %v1406_v10 = vsel %vm684_vm12, %v1176_v3, %v683_v9  ;;  %vm666_vm12 = vcmask 523264  }
 0x1c4   : > { %v1159_v1 = vpack.i.bf16 %v605_v0, %v590_v63  ;;  %v616_v17 = vmul.f32 %v612_v7, %v605_v0 }
 0x1c6   : > { %1160 = vrot.lane.b32.xlu2 %v1159_v1, %s1248_s16 }
 0x1ec   : > { %631 = vxpose.xlu2.c.b16.start.end [1/1] (short) (narrow) %v1365_v14, 16 }
 0x214   : > { %v675_v26 = vpop.xlane.xlu0 %674 }
 0x215   : > { %v686_v27 = vmul.f32 %v1406_v10, %v675_v26 }
 0x217   : > { %v688_v28 = vsub.f32 %v1398_v31, %v686_v27 }
 0x219   : > { %v690_v29 = vmul.f32 %v688_v28, %v688_v28 }
 0x21b   : > { %v692_v30 = vsel %vm470_vm3, %v690_v29, 0.0  ;;  %v628_v29 = vld [vmem:[#allocation4] sm:$0xff] }
 0x21c   : > { %v678_v11 = vpop.xlane.xlu1 %677 }
 0x21d   : > { %v687_v12 = vmul.f32 %v1406_v10, %v678_v11 }
 0x21f   : > { %v689_v13 = vsub.f32 %v568_v38, %v687_v12 }
 0x220   : > { %v1161_v16 = vpop.permute.xlu2 %1160 }
 0x221   : > { %v1163_v14 = vunpack.i.h.bf16 %v1161_v16  ;;  %v1162_v18 = vunpack.i.l.bf16 %v1161_v16  ;;  %v691_v19 = vmul.f32 %v689_v13, %v689_v13 }
 0x223   : > { %v695_v22 = vsel %vm470_vm3, %v691_v19, 0.0  ;;  %v625_v23 = vsel %vm470_vm3, %v615_v15, %v1162_v18  ;;  %v626_v24 = vsel %vm470_vm3, %v616_v17, %v1163_v14 }
 0x224   : > { %696 = vadd.xlane.f32.xlu0 %v695_v22  ;;  %v627_v25 = vpack.c.bf16 %v626_v24, %v625_v23 }
 0x226   : > { %657 = vmatpush.bf16.msra.mxu3 %v627_v25 }
 0x25d   : > { %693 = vadd.xlane.f32.xlu2 %v692_v30 }
 0x28d   : > { %v639_v32 = vpop.trf.xlu2 }
 0x28e   : > { %1109 = vmatmul.msk.bf16.vlgmr.msra.gmra.mxu3 %vm517_vm2, %v639_v32 }
 0x297   : > { %v697_v33 = vpop.xlane.xlu0 %696 }
 0x298   : > { %v699_v34 = vmul.f32 %v697_v33, %v1406_v10  ;;  %v629_v33 = vld [vmem:[#allocation4 + $0x8] sm:$0xff] }
 0x29a   : > { %v701_v35 = vadd.f32 1e-05, %v699_v34 }
 0x29c   : > { %1177 = vrsqrt.f32 %v701_v35  ;;  %vm718_vm14 = vweird.f32 %v701_v35 }
 0x2a2   : > { %v1178_v36 = vpop.eup %1177 }
 0x2a3   : > { %v713_v37 = vmul.f32 %v1178_v36, %v701_v35  ;;  %vm719_vm13 = vweird.f32 %v1178_v36 }
 0x2a4   : > { %vm720_vm15 = vmor %vm718_vm14, %vm719_vm13 }
 0x2a5   : > { %v714_v38 = vmul.f32 %v1178_v36, %v713_v37 }
 0x2a7   : > { %v715_v39 = vmul.f32 0.5, %v714_v38 }
 0x2a9   : > { %v716_v40 = vsub.f32 1.5, %v715_v39 }
 0x2ab   : > { %v717_v41 = vmul.f32 %v1178_v36, %v716_v40 }
 0x2ad   : > { %v721_v31 = vsel %vm720_vm15, %v1178_v36, %v717_v41 }
 0x2ae   : > { %v723_v43 = vmul.f32 %v721_v31, %v689_v13 }
 0x2b0   : > { %v728_v45 = vmul.f32 %v1165_v42, %v723_v43 }
 0x2b2   : > { %v733_v49 = vadd.f32 %v1166_v44, %v728_v45 }
 0x2b4   : > { %v1113_v50 = vmul.f32 -1.442695, %v733_v49 }
 0x2d0   : > { %v694_v46 = vpop.xlane.xlu2 %693 }
 0x2d1   : > { %v698_v47 = vmul.f32 %v694_v46, %v1406_v10 }
 0x2d3   : > { %v700_v48 = vadd.f32 1e-05, %v698_v47 }
 0x2d5   : > { %1179 = vrsqrt.f32 %v700_v48  ;;  %vm708_vm1 = vweird.f32 %v700_v48 }
 0x2d6   : > { %1181 = vpow2.f32 %v1113_v50 }
 0x2db   : > { %v1180_v51 = vpop.eup %1179 }
 0x2dc   : > { %v703_v52 = vmul.f32 %v1180_v51, %v700_v48  ;;  %v1182_v55 = vpop.eup %1181  ;;  %vm709_vm0 = vweird.f32 %v1180_v51 }
 0x2dd   : > { %v741_v58 = vadd.f32 1.0, %v1182_v55  ;;  %vm710_vm2 = vmor %vm708_vm1, %vm709_vm0 }
 0x2de   : > { %v704_v53 = vmul.f32 %v1180_v51, %v703_v52 }
 0x2df   : > { %1183 = vrcp.f32 %v741_v58  ;;  %v768_v8 = vand.u32 2147483648, %v741_v58  ;;  %vm762_vm5 = vweird.f32 %v741_v58  ;;  %v766_v11 = vand.u32 2147483647, %v741_v58 }
 0x2e0   : > { %v705_v54 = vmul.f32 0.5, %v704_v53 }
 0x2e1   : > { %v769_v16 = vor.u32 1.1754944e-38, %v768_v8  ;;  %vm767_vm8 = vcmp.eq.f32.partialorder %v766_v11, 8.507059e+37 }
 0x2e2   : > { %v706_v56 = vsub.f32 1.5, %v705_v54 }
 0x2e4   : > { %v707_v57 = vmul.f32 %v1180_v51, %v706_v56 }
 0x2e5   : > { %v1184_v0 = vpop.eup %1183 }
 0x2e6   : > { %v711_v59 = vsel %vm710_vm2, %v1180_v51, %v707_v57  ;;  %v758_v1 = vmul.f32 %v1184_v0, %v741_v58  ;;  %vm763_vm4 = vweird.f32 %v1184_v0 }
 0x2e7   : > { %v722_v60 = vmul.f32 %v711_v59, %v688_v28  ;;  %vm764_vm6 = vmor %vm762_vm5, %vm763_vm4 }
 0x2e8   : > { %v759_v3 = vsub.f32 1.0, %v758_v1 }
 0x2e9   : > { %v727_v61 = vmul.f32 %v1165_v42, %v722_v60 }
 0x2ea   : > { %v760_v5 = vmul.f32 %v1184_v0, %v759_v3 }
 0x2eb   : > { %v732_v62 = vadd.f32 %v1166_v44, %v727_v61 }
 0x2ec   : > { %v761_v7 = vadd.f32 %v1184_v0, %v760_v5 }
 0x2ed   : > { %v1112_v63 = vmul.f32 -1.442695, %v732_v62 }
 0x2ee   : > { %v765_v13 = vsel %vm764_vm6, %v1184_v0, %v761_v7 }
 0x2ef   : > { %1185 = vpow2.f32 %v1112_v63  ;;  %v770_v18 = vsel %vm767_vm8, %v769_v16, %v765_v13 }
 0x2f0   : > { %v773_v24 = vmul.f32 %v770_v18, %v733_v49 }
 0x2f2   : > { %v775_v28 = vadd.f32 %v773_v24, %v1389_v21 }
 0x2f4   : > { %777 = vst.msk [vmem:[%s1340_s29 + $0x8] sm:$0xff] %vm470_vm3, %v775_v28 }
 0x2f5   : > { %v1186_v2 = vpop.eup %1185 }
 0x2f6   : > { %v740_v4 = vadd.f32 1.0, %v1186_v2 }
 0x2f8   : > { %1187 = vrcp.f32 %v740_v4  ;;  %v753_v15 = vand.u32 2147483648, %v740_v4  ;;  %v751_v14 = vand.u32 2147483647, %v740_v4  ;;  %vm747_vm9 = vweird.f32 %v740_v4 }
 0x2fa   : > { %v754_v22 = vor.u32 1.1754944e-38, %v753_v15  ;;  %vm752_vm11 = vcmp.eq.f32.partialorder %v751_v14, 8.507059e+37 }
 0x2fe   : > { %v1188_v6 = vpop.eup %1187 }
 0x2ff   : > { %v743_v9 = vmul.f32 %v1188_v6, %v740_v4  ;;  %vm748_vm7 = vweird.f32 %v1188_v6 }
 0x300   : > { %vm749_vm10 = vmor %vm747_vm9, %vm748_vm7 }
 0x301   : > { %v744_v12 = vsub.f32 1.0, %v743_v9 }
 0x303   : > { %v745_v17 = vmul.f32 %v1188_v6, %v744_v12 }
 0x305   : > { %v746_v19 = vadd.f32 %v1188_v6, %v745_v17 }
 0x307   : > { %v750_v23 = vsel %vm749_vm10, %v1188_v6, %v746_v19 }
 0x308   : > { %v755_v25 = vsel %vm752_vm11, %v754_v22, %v750_v23 }
 0x309   : > { %v772_v26 = vmul.f32 %v755_v25, %v732_v62 }
 0x30b   : > { %v774_v27 = vadd.f32 %v772_v26, %v1384_v20 }
 0x30d   : > { %776 = vst.msk [vmem:[%s1340_s29] sm:$0xff] %vm470_vm3, %v774_v27  ;;  %s1252_s29 = smov (!%p1114_p5), 64  }
 0x311   : > { %v659_v30 = vpop.f32.mrf.mxu3 }
 0x312   : > { %v664_v32 = vadd.f32 %v659_v30, %v628_v29 }
 0x314   : > { %667 = vst.msk [vmem:[#allocation4] sm:$0xff] %vm666_vm12, %v664_v32 }
 0x318   : > { %781 = sbr.rel (%p1114_p5) target bundleno = 1657 (0x679), region = 64 }
 0x319   : > { %v661_v34 = vpop.f32.mrf.mxu3 }
 0x31a   : > { %v665_v35 = vadd.f32 %v661_v34, %v629_v33 }
 0x31c   : > { %668 = vst.msk [vmem:[#allocation4 + $0x8] sm:$0xff] %vm666_vm12, %v665_v35 }
 0x31d   : > { %v782_v36 = vld [vmem:[#allocation4] sm:$0xff]  ;;  %v824_v61 = vld [vmem:[#allocation2] sm:$0xff]  ;;  %v825_v0 = vld [vmem:[#allocation2 + $0x8] sm:$0xff] }
 0x31e   : > { %v784_v20 = vadd.f32 1e-06, %v782_v36  ;;  %v1189_v17 = vld [vmem:[%s1478_s8] ss:$0 sm:$0xff]  ;;  %v1190_v23 = vld [vmem:[%s1478_s8 + $0x1] ss:$0 sm:$0xff] }
 0x320   : > { %788 = vrot.lane.b32.xlu0 %v784_v20, %s1251_s28 }
 0x323   : > { %v783_v21 = vld [vmem:[#allocation4 + $0x8] sm:$0xff] }
 0x324   : > { %v785_v37 = vadd.f32 1e-06, %v783_v21 }
 0x328   : > { %790 = vrot.lane.b32.xlu0 %v785_v37, %s1251_s28 }
 0x392   : > { %v789_v38 = vpop.permute.xlu0 %788 }
 0x393   : > { %1191 = vrcp.f32 %v789_v38  ;;  %v805_v42 = vand.u32 2147483648, %v789_v38  ;;  %v803_v44 = vand.u32 2147483647, %v789_v38  ;;  %vm799_vm14 = vweird.f32 %v789_v38 }
 0x395   : > { %v806_v47 = vor.u32 1.1754944e-38, %v805_v42  ;;  %vm804_vm0 = vcmp.eq.f32.partialorder %v803_v44, 8.507059e+37 }
 0x399   : > { %v1192_v39 = vpop.eup %1191 }
 0x39a   : > { %v795_v40 = vmul.f32 %v1192_v39, %v789_v38  ;;  %v791_v41 = vpop.permute.xlu0 %790  ;;  %vm800_vm13 = vweird.f32 %v1192_v39 }
 0x39b   : > { %1193 = vrcp.f32 %v791_v41  ;;  %vm801_vm15 = vmor %vm799_vm14, %vm800_vm13  ;;  %v820_v53 = vand.u32 2147483648, %v791_v41  ;;  %v818_v55 = vand.u32 2147483647, %v791_v41  ;;  %vm814_vm2 = vweird.f32 %v791_v41 }
 0x39c   : > { %v796_v31 = vsub.f32 1.0, %v795_v40 }
 0x39d   : > { %v821_v57 = vor.u32 1.1754944e-38, %v820_v53  ;;  %vm819_vm5 = vcmp.eq.f32.partialorder %v818_v55, 8.507059e+37 }
 0x39e   : > { %v797_v43 = vmul.f32 %v1192_v39, %v796_v31 }
 0x3a0   : > { %v798_v45 = vadd.f32 %v1192_v39, %v797_v43 }
 0x3a1   : > { %v1194_v46 = vpop.eup %1193 }
 0x3a2   : > { %v810_v48 = vmul.f32 %v1194_v46, %v791_v41  ;;  %v802_v49 = vsel %vm801_vm15, %v1192_v39, %v798_v45  ;;  %vm815_vm1 = vweird.f32 %v1194_v46 }
 0x3a3   : > { %v807_v50 = vsel %vm804_vm0, %v806_v47, %v802_v49  ;;  %vm816_vm4 = vmor %vm814_vm2, %vm815_vm1 }
 0x3a4   : > { %v811_v51 = vsub.f32 1.0, %v810_v48  ;;  %v808_v52 = vmul.f32 %v807_v50, %v782_v36 }
 0x3a6   : > { %v812_v54 = vmul.f32 %v1194_v46, %v811_v51  ;;  %828 = vrot.lane.b32.xlu1 %v808_v52, %s1252_s29 }
 0x3a8   : > { %v813_v56 = vadd.f32 %v1194_v46, %v812_v54 }
 0x3aa   : > { %v817_v58 = vsel %vm816_vm4, %v1194_v46, %v813_v56 }
 0x3ab   : > { %v822_v59 = vsel %vm819_vm5, %v821_v57, %v817_v58 }
 0x3ac   : > { %v823_v60 = vmul.f32 %v822_v59, %v783_v21 }
 0x3ae   : > { %830 = vrot.lane.b32.xlu1 %v823_v60, %s1252_s29 }
 0x418   : > { %v829_v62 = vpop.permute.xlu1 %828 }
 0x419   : > { %v834_v63 = vadd.f32 %v829_v62, %v824_v61 }
 0x41b   : > { %841 = vrot.lane.b32.xlu2 %v834_v63, %s1252_s29 }
 0x420   : > { %v831_v1 = vpop.permute.xlu1 %830 }
 0x421   : > { %v835_v2 = vadd.f32 %v831_v1, %v825_v0 }
 0x423   : > { %843 = vrot.lane.b32.xlu2 %v835_v2, %s1252_s29 }
 0x475   : > { %v842_v3 = vpop.permute.xlu2 %841 }
 0x476   : > { %v847_v4 = vsel %vm470_vm3, %v842_v3, 0.0 }
 0x477   : > { %848 = vadd.xlane.f32.xlu0 %v847_v4 }
 0x47d   : > { %v844_v5 = vpop.permute.xlu2 %843 }
 0x47e   : > { %v850_v6 = vsel %vm470_vm3, %v844_v5, 0.0 }
 0x47f   : > { %851 = vadd.xlane.f32.xlu1 %v850_v6 }
 0x498   : > { %901 = vrot.lane.b32.xlu1 %v1189_v17, %s1252_s29 }
 0x4ea   : > { %v849_v7 = vpop.xlane.xlu0 %848 }
 0x4eb   : > { %v853_v8 = vmul.f32 %v849_v7, %v1406_v10 }
 0x4ed   : > { %v855_v9 = vsub.f32 %v834_v63, %v853_v8 }
 0x4ef   : > { %v857_v11 = vmul.f32 %v855_v9, %v855_v9 }
 0x4f1   : > { %861 = vrot.lane.b32.xlu2 %v857_v11, %s1252_s29 }
 0x4f2   : > { %v852_v12 = vpop.xlane.xlu1 %851 }
 0x4f3   : > { %v854_v13 = vmul.f32 %v852_v12, %v1406_v10 }
 0x4f5   : > { %v856_v15 = vsub.f32 %v835_v2, %v854_v13 }
 0x4f7   : > { %v858_v16 = vmul.f32 %v856_v15, %v856_v15 }
 0x4f9   : > { %863 = vrot.lane.b32.xlu2 %v858_v16, %s1252_s29 }
 0x50a   : > { %v902_v38 = vpop.permute.xlu1 %901 }
 0x54b   : > { %v862_v14 = vpop.permute.xlu2 %861 }
 0x54c   : > { %v867_v18 = vsel %vm470_vm3, %v862_v14, 0.0  ;;  %v954_v14 = vld [vmem:[%s1470_s0 + $0x8] sm:$0xff] }
 0x54d   : > { %868 = vadd.xlane.f32.xlu2 %v867_v18 }
 0x553   : > { %v864_v19 = vpop.permute.xlu2 %863 }
 0x554   : > { %v870_v22 = vsel %vm470_vm3, %v864_v19, 0.0 }
 0x555   : > { %871 = vadd.xlane.f32.xlu0 %v870_v22 }
 0x569   : > { %908 = vrot.lane.b32.xlu0 %v1190_v23, %s1252_s29 }
 0x5c0   : > { %v869_v24 = vpop.xlane.xlu2 %868 }
 0x5c1   : > { %v873_v25 = vmul.f32 %v869_v24, %v1406_v10 }
 0x5c3   : > { %v875_v26 = vadd.f32 1e-05, %v873_v25 }
 0x5c5   : > { %1195 = vrsqrt.f32 %v875_v26  ;;  %vm883_vm7 = vweird.f32 %v875_v26 }
 0x5c8   : > { %v872_v27 = vpop.xlane.xlu0 %871 }
 0x5c9   : > { %v874_v28 = vmul.f32 %v872_v27, %v1406_v10 }
 0x5cb   : > { %v1196_v29 = vpop.eup %1195  ;;  %v876_v30 = vadd.f32 1e-05, %v874_v28 }
 0x5cc   : > { %v878_v32 = vmul.f32 %v1196_v29, %v875_v26  ;;  %vm884_vm6 = vweird.f32 %v1196_v29 }
 0x5cd   : > { %1197 = vrsqrt.f32 %v876_v30  ;;  %vm885_vm8 = vmor %vm883_vm7, %vm884_vm6  ;;  %vm893_vm10 = vweird.f32 %v876_v30 }
 0x5ce   : > { %v879_v33 = vmul.f32 %v1196_v29, %v878_v32 }
 0x5d0   : > { %v880_v34 = vmul.f32 0.5, %v879_v33 }
 0x5d2   : > { %v881_v35 = vsub.f32 1.5, %v880_v34 }
 0x5d3   : > { %v1198_v36 = vpop.eup %1197 }
 0x5d4   : > { %v888_v20 = vmul.f32 %v1198_v36, %v876_v30  ;;  %v882_v21 = vmul.f32 %v1196_v29, %v881_v35  ;;  %vm894_vm9 = vweird.f32 %v1198_v36 }
 0x5d5   : > { %vm895_vm11 = vmor %vm893_vm10, %vm894_vm9 }
 0x5d6   : > { %v889_v37 = vmul.f32 %v1198_v36, %v888_v20  ;;  %v886_v39 = vsel %vm885_vm8, %v1196_v29, %v882_v21 }
 0x5d7   : > { %v897_v40 = vmul.f32 %v886_v39, %v855_v9 }
 0x5d8   : > { %v890_v41 = vmul.f32 0.5, %v889_v37 }
 0x5d9   : > { %v904_v31 = vmul.f32 %v902_v38, %v897_v40 }
 0x5da   : > { %v891_v10 = vsub.f32 1.5, %v890_v41 }
 0x5db   : > { %v909_v42 = vpop.permute.xlu0 %908 }
 0x5dc   : > { %v892_v43 = vmul.f32 %v1198_v36, %v891_v10  ;;  %v911_v44 = vadd.f32 %v909_v42, %v904_v31 }
 0x5de   : > { %v896_v45 = vsel %vm895_vm11, %v1198_v36, %v892_v43  ;;  %v1116_v46 = vmul.f32 -1.442695, %v911_v44 }
 0x5df   : > { %v898_v47 = vmul.f32 %v896_v45, %v856_v15  ;;  %v953_v15 = vld [vmem:[%s1470_s0] sm:$0xff] }
 0x5e0   : > { %1199 = vpow2.f32 %v1116_v46 }
 0x5e1   : > { %v905_v48 = vmul.f32 %v902_v38, %v898_v47 }
 0x5e3   : > { %v912_v49 = vadd.f32 %v909_v42, %v905_v48 }
 0x5e5   : > { %v1117_v50 = vmul.f32 -1.442695, %v912_v49 }
 0x5e6   : > { %v1200_v51 = vpop.eup %1199 }
 0x5e7   : > { %1201 = vpow2.f32 %v1117_v50  ;;  %v919_v52 = vadd.f32 1.0, %v1200_v51 }
 0x5e9   : > { %1203 = vrcp.f32 %v919_v52  ;;  %v932_v58 = vand.u32 2147483648, %v919_v52  ;;  %v930_v60 = vand.u32 2147483647, %v919_v52  ;;  %vm926_vm13 = vweird.f32 %v919_v52 }
 0x5eb   : > { %v933_v63 = vor.u32 1.1754944e-38, %v932_v58  ;;  %vm931_vm15 = vcmp.eq.f32.partialorder %v930_v60, 8.507059e+37 }
 0x5ed   : > { %v1202_v53 = vpop.eup %1201 }
 0x5ee   : > { %v920_v54 = vadd.f32 1.0, %v1202_v53 }
 0x5ef   : > { %v1204_v55 = vpop.eup %1203 }
 0x5f0   : > { %v922_v56 = vmul.f32 %v1204_v55, %v919_v52  ;;  %1205 = vrcp.f32 %v920_v54  ;;  %vm927_vm12 = vweird.f32 %v1204_v55  ;;  %v947_v4 = vand.u32 2147483648, %v920_v54 }
 0x5f1   : > { %vm928_vm14 = vmor %vm926_vm13, %vm927_vm12  ;;  %v945_v7 = vand.u32 2147483647, %v920_v54  ;;  %vm941_vm1 = vweird.f32 %v920_v54 }
 0x5f2   : > { %v923_v57 = vsub.f32 1.0, %v922_v56  ;;  %v948_v9 = vor.u32 1.1754944e-38, %v947_v4 }
 0x5f3   : > { %vm946_vm4 = vcmp.eq.f32.partialorder %v945_v7, 8.507059e+37 }
 0x5f4   : > { %v924_v59 = vmul.f32 %v1204_v55, %v923_v57 }
 0x5f6   : > { %v1206_v61 = vpop.eup %1205  ;;  %v925_v62 = vadd.f32 %v1204_v55, %v924_v59 }
 0x5f7   : > { %v937_v0 = vmul.f32 %v1206_v61, %v920_v54  ;;  %vm942_vm0 = vweird.f32 %v1206_v61 }
 0x5f8   : > { %v929_v1 = vsel %vm928_vm14, %v1204_v55, %v925_v62  ;;  %vm943_vm2 = vmor %vm941_vm1, %vm942_vm0 }
 0x5f9   : > { %v934_v2 = vsel %vm931_vm15, %v933_v63, %v929_v1  ;;  %v938_v3 = vsub.f32 1.0, %v937_v0 }
 0x5fa   : > { %v951_v5 = vmul.f32 %v934_v2, %v911_v44 }
 0x5fb   : > { %v939_v6 = vmul.f32 %v1206_v61, %v938_v3 }
 0x5fc   : > { %957 = vrot.lane.b32.xlu2 %v951_v5, %s1252_s29 }
 0x5fd   : > { %v940_v8 = vadd.f32 %v1206_v61, %v939_v6 }
 0x5ff   : > { %v944_v11 = vsel %vm943_vm2, %v1206_v61, %v940_v8 }
 0x600   : > { %v949_v12 = vsel %vm946_vm4, %v948_v9, %v944_v11 }
 0x601   : > { %v952_v13 = vmul.f32 %v949_v12, %v912_v49 }
 0x603   : > { %959 = vrot.lane.b32.xlu1 %v952_v13, %s1252_s29 }
 0x656   : > { %v958_v16 = vpop.permute.xlu2 %957 }
 0x657   : > { %v963_v17 = vadd.f32 %v958_v16, %v953_v15 }
 0x659   : > { %965 = vst.msk [vmem:[#allocation5] sm:$0xff] %vm470_vm3, %v963_v17 }
 0x675   : > { %v960_v18 = vpop.permute.xlu1 %959 }
 0x676   : > { %v964_v19 = vadd.f32 %v960_v18, %v954_v14 }
 0x678   : > { %966 = vst.msk [vmem:[#allocation5 + $0x8] sm:$0xff] %vm470_vm3, %v964_v19 }
 0x679 PF: > { %p1138_p6 = scmp.eq.s32.totalorder %s1317_s14, 2  ;;  %s1253_s16 = smov [#allocation5]  }
 0x67a   : > { %s977_s19 = sshll.u32 %s1253_s16, 4  ;;  %s979_s20 = sshll.u32 %s1479_s9, 4  ;;  %s978_s19 = int_to_ptr.vmem [resolvable:$true] %s977_s19  ;;  %s980_s20 = int_to_ptr.hbm [resolvable:$true] %s979_s20 }
 0x67b   : > { %s1254_s24 = smov 128   ;;  %s1255_s25 = smov 8  }
 0x67c   : > { %1135 = dma.vmem_to_hbm [thread:$0]  (%p1138_p6), %s978_s19, 256, %s980_s20, [#allocation6], %s1254_s24, %s1254_s24, %s1255_s25  }
 0x67d   : > { %1240 = dma.done.wait (%p1138_p6), [#allocation6], 256  }
 0x67e   : > { %1242 = vsyncadd (%p1138_p6), [#allocation6], 4294967040 }
 0x67f PF: > { %s22_s13 = sadd.s32 1, %s1245_s13  }
 0x680   : > { %p19_p7 = scmp.ge.s32.totalorder %s22_s13, 5  }
 0x682   :  { %21 = sbr.rel (!%p19_p7) target bundleno = 1 (0x1), region = 112 }
 0x687   :  { %1008 = vsyncpa [#allocation6], 1 }
 0x688   :  { %1010 = vsyncpa [#allocation6 + $0x1], 1 }

</bundles_post_ra>
